<compile_context>
chip_gen: v7x
topology: tpu7x:2x2x1
jax: 0.10.0
libtpu: 0.0.40
codegen_flags: <defaults>
</compile_context>

<pallas_src>
import math

import jax
import jax.numpy as jnp
from jax import lax
from jax.experimental import pallas as pl
from jax.experimental.pallas import tpu as pltpu


# ----------------------------- in-kernel math --------------------------------

def _erf(x):
    # Abramowitz & Stegun 7.1.26 rational approximation (|err| < 1.5e-7).
    # Uses only exp / mul / add / where, all of which lower cleanly in Mosaic
    # (avoids depending on a lax.erf lowering inside the kernel).
    p = 0.3275911
    a1, a2, a3, a4, a5 = (0.254829592, -0.284496736, 1.421413741,
                          -1.453152027, 1.061405429)
    ax = jnp.abs(x)
    t = 1.0 / (1.0 + p * ax)
    poly = ((((a5 * t + a4) * t + a3) * t + a2) * t + a1) * t
    y = 1.0 - poly * jnp.exp(-ax * ax)
    return jnp.where(x >= 0, y, -y)


def _gelu(x):
    # exact GELU (PyTorch nn.GELU default): 0.5*x*(1+erf(x/sqrt(2)))
    return 0.5 * x * (1.0 + _erf(x * 0.7071067811865476))


# ----------------------------- Pallas kernel ---------------------------------

def sparse_mlp_kernel(x_ref, a_ref, g_ref, b_ref, ks_ref, kh_ref, wm_ref,
                      cb_ref, bh_ref, o_ref):
    """Fused LayerNorm + GELU + all axial / fuse projections.

    x_ref  : (tm, WDC) f32   rows = tb whole batches x H; lanes = (w, d, c)
    a_ref  : (WDC, WDC) f32  per-C-group averaging operator (LN statistics)
    g_ref  : (1, WDC)  f32   LayerNorm gamma tiled over (w, d)
    b_ref  : (1, WDC)  f32   LayerNorm beta tiled over (w, d)
    ks_ref : (WDC, WDC) bf16 composed y / proj_w / proj_d -> fuse operator
    kh_ref : (WDC, WDC) bf16 fuse_h operator (H mixing applied below)
    wm_ref : (tm, tm)  f32   block-diagonal H mixer kron(I_tb, W_h)
    cb_ref : (1, WDC)  f32   constant bias (bw, bd, bf contributions)
    bh_ref : (tm, WDC) f32   per-row bias of the H path (bh * rowsum(fuse_h))
    o_ref  : (tm, WDC) f32
    """
    x = x_ref[...]
    a = a_ref[...]
    # LayerNorm statistics as lane-dense f32 matmuls: keeps all 128 lanes busy
    # even though the normalized group (C) is tiny, and needs no lane relayout.
    mu = jnp.dot(x, a, preferred_element_type=jnp.float32)
    cent = x - mu
    var = jnp.dot(cent * cent, a, preferred_element_type=jnp.float32)
    y = _gelu(cent * lax.rsqrt(var + 1e-5) * g_ref[...] + b_ref[...])

    yb = y.astype(jnp.bfloat16)          # bf16 MXU operands, f32 accumulation
    out_self = jnp.dot(yb, ks_ref[...], preferred_element_type=jnp.float32)
    z_h = jnp.dot(yb, kh_ref[...], preferred_element_type=jnp.float32)
    # H mixing is block-diagonal per batch -> a single small left matmul.
    mix = jnp.dot(wm_ref[...], z_h, preferred_element_type=jnp.float32)
    o_ref[...] = out_self + mix + cb_ref[...] + bh_ref[...]


# ----------------------------- tiling helpers --------------------------------

def _round_up(a, b):
    return (a + b - 1) // b * b


def _pick_row_tile(m_rows, h, wdc, vmem_budget=8 << 20, cap=512):
    """Row tile: multiple of lcm(H, 8) (whole batches + sublane alignment),
    bounded by a double-buffered VMEM budget, capped, and kept small enough to
    give >= 2 grid steps when possible (both v7x TensorCores busy)."""
    base = h * (8 // math.gcd(h, 8))                  # lcm(H, 8)
    bytes_per_row = wdc * 4 * 2 * 2                   # x + out, f32, 2 buffers
    tm = max(base, (vmem_budget // max(bytes_per_row, 1)) // base * base)
    tm = min(tm, max(base, cap // base * base))
    if m_rows >= 2 * base:
        tm = min(tm, max(base, (m_rows // 2) // base * base))
    return tm


# ----------------------------- forward ---------------------------------------

def sparse_mlp_forward(x, params):
    B, H, W, D, C = x.shape
    WDC = W * D * C
    f32, bf16 = jnp.float32, jnp.bfloat16

    gamma, beta = params["ln_g"], params["ln_b"]
    wh, bh = params["wh"], params["bh"]
    ww, bw = params["ww"], params["bw"]
    wd, bd = params["wd"], params["bd"]
    wf, fb = params["wf"], params["bf"]

    # fuse weight column blocks, matching torch.cat([y, x_h, x_w, x_d], -1)
    wfy, wfh, wfw, wfd = (wf[:, 0:C], wf[:, C:2 * C],
                          wf[:, 2 * C:3 * C], wf[:, 3 * C:4 * C])

    i_w = jnp.eye(W, dtype=f32)
    i_d = jnp.eye(D, dtype=f32)

    # Composed (WDC x WDC) operators over the flattened (w, d, c) lane axis.
    #   input lane = (w, d, c), output lane = (x, y, z)
    # TODO(synk): for very large W*D*C these dense operators get FLOP / VMEM
    #             heavy; a per-axis tiled variant would be needed there.
    k_self = (
        jnp.einsum("wx,dy,zc->wdcxyz", i_w, i_d, wfy)        # y path
        + jnp.einsum("xw,dy,zc->wdcxyz", ww, i_d, wfw)       # proj_w -> fuse_w
        + jnp.einsum("wx,yd,zc->wdcxyz", i_w, wd, wfd)       # proj_d -> fuse_d
    ).reshape(WDC, WDC)
    k_h = jnp.einsum("wx,dy,zc->wdcxyz", i_w, i_d, wfh).reshape(WDC, WDC)

    # LayerNorm per-C-group averaging as a lane-dense operator.
    a_mean = jnp.kron(jnp.eye(W * D, dtype=f32),
                      jnp.full((C, C), 1.0 / C, dtype=f32))

    gamma_t = jnp.tile(gamma.astype(f32), W * D).reshape(1, WDC)
    beta_t = jnp.tile(beta.astype(f32), W * D).reshape(1, WDC)

    # Constant (bw, bd, bf) and per-h (bh) bias contributions of the fuse.
    sw, sd, sh = wfw.sum(axis=1), wfd.sum(axis=1), wfh.sum(axis=1)
    cbias = (bw[:, None, None] * sw[None, None, :]
             + bd[None, :, None] * sd[None, None, :]
             + fb[None, None, :]).reshape(1, WDC).astype(f32)
    bias_h = jnp.broadcast_to((bh[:, None] * sh[None, :])[:, None, None, :],
                              (H, W, D, C)).reshape(H, WDC).astype(f32)

    # Row tiling over rows = (b, h); every block holds `tb` whole batches so
    # the H mixing is block-diagonal and local to the block.
    m_rows = B * H
    tm = _pick_row_tile(m_rows, H, WDC)
    tb = tm // H
    m_pad = _round_up(m_rows, tm)

    x2 = x.reshape(m_rows, WDC).astype(f32)
    if m_pad != m_rows:     # pad whole pseudo-batches; padded rows sliced off
        x2 = jnp.pad(x2, ((0, m_pad - m_rows), (0, 0)))

    w_mix = jnp.kron(jnp.eye(tb, dtype=f32), wh.astype(f32))       # (tm, tm)
    bias_h_t = jnp.tile(bias_h, (tb, 1))                           # (tm, WDC)

    out = pl.pallas_call(
        sparse_mlp_kernel,
        out_shape=jax.ShapeDtypeStruct((m_pad, WDC), f32),
        grid=(m_pad // tm,),
        in_specs=[
            pl.BlockSpec((tm, WDC), lambda i: (i, 0)),        # x      (streamed)
            pl.BlockSpec((WDC, WDC), lambda i: (0, 0)),       # a_mean (resident)
            pl.BlockSpec((1, WDC), lambda i: (0, 0)),         # gamma  (resident)
            pl.BlockSpec((1, WDC), lambda i: (0, 0)),         # beta   (resident)
            pl.BlockSpec((WDC, WDC), lambda i: (0, 0)),       # k_self (resident)
            pl.BlockSpec((WDC, WDC), lambda i: (0, 0)),       # k_h    (resident)
            pl.BlockSpec((tm, tm), lambda i: (0, 0)),         # w_mix  (resident)
            pl.BlockSpec((1, WDC), lambda i: (0, 0)),         # cbias  (resident)
            pl.BlockSpec((tm, WDC), lambda i: (0, 0)),        # bias_h (resident)
        ],
        out_specs=pl.BlockSpec((tm, WDC), lambda i: (i, 0)),
        compiler_params=pltpu.CompilerParams(
            dimension_semantics=("parallel",),
            vmem_limit_bytes=32 * 1024 * 1024,
        ),
    )(x2, a_mean, gamma_t, beta_t, k_self.astype(bf16), k_h.astype(bf16),
      w_mix, cbias, bias_h_t)

    if m_pad != m_rows:
        out = out[:m_rows]
    return out.reshape(B, H, W, D, C)


# ----------------------------- pure-JAX reference ----------------------------

def sparse_mlp_reference(x, p):
    mean = jnp.mean(x, axis=-1, keepdims=True)
    var = jnp.mean(jnp.square(x - mean), axis=-1, keepdims=True)
    y = (x - mean) * lax.rsqrt(var + 1e-5) * p["ln_g"] + p["ln_b"]
    y = 0.5 * y * (1.0 + lax.erf(y * 0.7071067811865476))
    xh = jnp.einsum("ph,bhwdc->bpwdc", p["wh"], y) + p["bh"][None, :, None, None, None]
    xw = jnp.einsum("pw,bhwdc->bhpdc", p["ww"], y) + p["bw"][None, None, :, None, None]
    xd = jnp.einsum("pd,bhwdc->bhwpc", p["wd"], y) + p["bd"][None, None, None, :, None]
    cat = jnp.concatenate([y, xh, xw, xd], axis=-1)
    return jnp.einsum("oc,bhwdc->bhwdo", p["wf"], cat) + p["bf"]


def init_params(key, num_channels, feat_size):
    H, W, D = feat_size
    C = num_channels
    ks = jax.random.split(key, 4)

    def lin(k, fan_out, fan_in):
        bound = 1.0 / math.sqrt(fan_in)
        kw, kb = jax.random.split(k)
        w = jax.random.uniform(kw, (fan_out, fan_in), jnp.float32, -bound, bound)
        b = jax.random.uniform(kb, (fan_out,), jnp.float32, -bound, bound)
        return w, b

    wh, bh = lin(ks[0], H, H)
    ww, bw = lin(ks[1], W, W)
    wd, bd = lin(ks[2], D, D)
    wf, bf = lin(ks[3], C, 4 * C)
    return dict(
        ln_g=jnp.ones((C,), jnp.float32),
        ln_b=jnp.zeros((C,), jnp.float32),
        wh=wh, bh=bh, ww=ww, bw=bw, wd=wd, bd=bd, wf=wf, bf=bf,
    )


if __name__ == "__main__":
    key = jax.random.PRNGKey(0)
    B, C = 2, 4
    feat_size = (8, 8, 8)  # (H, W, D)

    k_x, k_p = jax.random.split(key)
    x = jax.random.normal(k_x, (B, *feat_size, C), jnp.float32)
    params = init_params(k_p, C, feat_size)

    fwd = jax.jit(sparse_mlp_forward)
    out = jax.block_until_ready(fwd(x, params))
    ref = jax.block_until_ready(sparse_mlp_reference(x, params))

    assert out.shape == (B, *feat_size, C)
    # bf16 MXU operands (f32 accumulation) -> loose but meaningful tolerance
    max_err = float(jnp.max(jnp.abs(out - ref)))
    assert max_err < 2e-2, f"max abs err {max_err}"
    print("KERNEL_OK")
</pallas_src>

<mosaic_0001>
module attributes {stable_mosaic.version = 11 : i64} {
  func.func @sparse_mlp_kernel(%arg0: i32, %arg1: memref<8x256xf32, #tpu.memory_space<vmem>>, %arg2: memref<256x256xf32, #tpu.memory_space<vmem>>, %arg3: memref<1x256xf32, #tpu.memory_space<vmem>>, %arg4: memref<1x256xf32, #tpu.memory_space<vmem>>, %arg5: memref<256x256xbf16, #tpu.memory_space<vmem>>, %arg6: memref<256x256xbf16, #tpu.memory_space<vmem>>, %arg7: memref<8x8xf32, #tpu.memory_space<vmem>>, %arg8: memref<1x256xf32, #tpu.memory_space<vmem>>, %arg9: memref<8x256xf32, #tpu.memory_space<vmem>>, %arg10: memref<8x256xf32, #tpu.memory_space<vmem>>) attributes {dimension_semantics = [#tpu.dimension_semantics<parallel>], iteration_bounds = array<i64: 2>, scalar_prefetch = 0 : i64, scratch_operands = 0 : i64, tpu.core_type = #tpu.core_type<tc>, window_params = [{transform_indices = @transform_0, window_bounds = array<i64: 8, 256>}, {pipeline_mode = #tpu.pipeline_mode<synchronous>, transform_indices = @transform_1, window_bounds = array<i64: 256, 256>}, {pipeline_mode = #tpu.pipeline_mode<synchronous>, transform_indices = @transform_2, window_bounds = array<i64: 1, 256>}, {pipeline_mode = #tpu.pipeline_mode<synchronous>, transform_indices = @transform_3, window_bounds = array<i64: 1, 256>}, {pipeline_mode = #tpu.pipeline_mode<synchronous>, transform_indices = @transform_4, window_bounds = array<i64: 256, 256>}, {pipeline_mode = #tpu.pipeline_mode<synchronous>, transform_indices = @transform_5, window_bounds = array<i64: 256, 256>}, {pipeline_mode = #tpu.pipeline_mode<synchronous>, transform_indices = @transform_6, window_bounds = array<i64: 8, 8>}, {pipeline_mode = #tpu.pipeline_mode<synchronous>, transform_indices = @transform_7, window_bounds = array<i64: 1, 256>}, {pipeline_mode = #tpu.pipeline_mode<synchronous>, transform_indices = @transform_8, window_bounds = array<i64: 8, 256>}, {transform_indices = @transform_9, window_bounds = array<i64: 8, 256>}]} {
    %c0 = arith.constant 0 : index
    %c0_0 = arith.constant 0 : index
    %0 = vector.load %arg1[%c0, %c0_0] : memref<8x256xf32, #tpu.memory_space<vmem>>, vector<8x256xf32>
    %c0_1 = arith.constant 0 : index
    %c0_2 = arith.constant 0 : index
    %1 = vector.load %arg2[%c0_1, %c0_2] : memref<256x256xf32, #tpu.memory_space<vmem>>, vector<256x256xf32>
    %cst = arith.constant dense<0.000000e+00> : vector<8x256xf32>
    %2 = tpu.matmul %0, %1, %cst {dimension_numbers = #tpu.dot_dimension_numbers<[1], [0], [0], [1], [0, 0, 1, 1], [], []>} : vector<8x256xf32>, vector<256x256xf32>, vector<8x256xf32> -> vector<8x256xf32>
    %3 = arith.subf %0, %2 : vector<8x256xf32>
    %4 = arith.mulf %3, %3 : vector<8x256xf32>
    %cst_3 = arith.constant dense<0.000000e+00> : vector<8x256xf32>
    %5 = tpu.matmul %4, %1, %cst_3 {dimension_numbers = #tpu.dot_dimension_numbers<[1], [0], [0], [1], [0, 0, 1, 1], [], []>} : vector<8x256xf32>, vector<256x256xf32>, vector<8x256xf32> -> vector<8x256xf32>
    %cst_4 = arith.constant 9.99999974E-6 : f32
    %6 = vector.broadcast %cst_4 : f32 to vector<8x256xf32>
    %7 = arith.addf %5, %6 : vector<8x256xf32>
    %8 = math.rsqrt %7 : vector<8x256xf32>
    %9 = arith.mulf %3, %8 : vector<8x256xf32>
    %c0_5 = arith.constant 0 : index
    %c0_6 = arith.constant 0 : index
    %10 = vector.load %arg3[%c0_5, %c0_6] : memref<1x256xf32, #tpu.memory_space<vmem>>, vector<1x256xf32>
    %11 = vector.broadcast %10 : vector<1x256xf32> to vector<8x256xf32>
    %12 = arith.mulf %9, %11 : vector<8x256xf32>
    %c0_7 = arith.constant 0 : index
    %c0_8 = arith.constant 0 : index
    %13 = vector.load %arg4[%c0_7, %c0_8] : memref<1x256xf32, #tpu.memory_space<vmem>>, vector<1x256xf32>
    %14 = vector.broadcast %13 : vector<1x256xf32> to vector<8x256xf32>
    %15 = arith.addf %12, %14 : vector<8x256xf32>
    %cst_9 = arith.constant 5.000000e-01 : f32
    %16 = vector.broadcast %cst_9 : f32 to vector<8x256xf32>
    %17 = arith.mulf %16, %15 : vector<8x256xf32>
    %cst_10 = arith.constant 0.707106769 : f32
    %18 = vector.broadcast %cst_10 : f32 to vector<8x256xf32>
    %19 = arith.mulf %15, %18 : vector<8x256xf32>
    %20 = math.absf %19 : vector<8x256xf32>
    %cst_11 = arith.constant 0.327591091 : f32
    %21 = vector.broadcast %cst_11 : f32 to vector<8x256xf32>
    %22 = arith.mulf %21, %20 : vector<8x256xf32>
    %cst_12 = arith.constant 1.000000e+00 : f32
    %23 = vector.broadcast %cst_12 : f32 to vector<8x256xf32>
    %24 = arith.addf %23, %22 : vector<8x256xf32>
    %cst_13 = arith.constant 1.000000e+00 : f32
    %25 = vector.broadcast %cst_13 : f32 to vector<8x256xf32>
    %26 = arith.divf %25, %24 : vector<8x256xf32>
    %cst_14 = arith.constant 1.06140542 : f32
    %27 = vector.broadcast %cst_14 : f32 to vector<8x256xf32>
    %28 = arith.mulf %27, %26 : vector<8x256xf32>
    %cst_15 = arith.constant -1.45315206 : f32
    %29 = vector.broadcast %cst_15 : f32 to vector<8x256xf32>
    %30 = arith.addf %28, %29 : vector<8x256xf32>
    %31 = arith.mulf %30, %26 : vector<8x256xf32>
    %cst_16 = arith.constant 1.42141378 : f32
    %32 = vector.broadcast %cst_16 : f32 to vector<8x256xf32>
    %33 = arith.addf %31, %32 : vector<8x256xf32>
    %34 = arith.mulf %33, %26 : vector<8x256xf32>
    %cst_17 = arith.constant -0.284496725 : f32
    %35 = vector.broadcast %cst_17 : f32 to vector<8x256xf32>
    %36 = arith.addf %34, %35 : vector<8x256xf32>
    %37 = arith.mulf %36, %26 : vector<8x256xf32>
    %cst_18 = arith.constant 0.254829586 : f32
    %38 = vector.broadcast %cst_18 : f32 to vector<8x256xf32>
    %39 = arith.addf %37, %38 : vector<8x256xf32>
    %40 = arith.mulf %39, %26 : vector<8x256xf32>
    %cst_19 = arith.constant 0.000000e+00 : f32
    %41 = vector.broadcast %cst_19 : f32 to vector<8x256xf32>
    %42 = arith.subf %41, %20 : vector<8x256xf32>
    %43 = arith.mulf %42, %20 : vector<8x256xf32>
    %44 = math.exp %43 : vector<8x256xf32>
    %45 = arith.mulf %40, %44 : vector<8x256xf32>
    %cst_20 = arith.constant 1.000000e+00 : f32
    %46 = vector.broadcast %cst_20 : f32 to vector<8x256xf32>
    %47 = arith.subf %46, %45 : vector<8x256xf32>
    %cst_21 = arith.constant 0.000000e+00 : f32
    %48 = vector.broadcast %cst_21 : f32 to vector<8x256xf32>
    %49 = arith.cmpf oge, %19, %48 : vector<8x256xf32>
    %cst_22 = arith.constant 0.000000e+00 : f32
    %50 = vector.broadcast %cst_22 : f32 to vector<8x256xf32>
    %51 = arith.subf %50, %47 : vector<8x256xf32>
    %52 = arith.select %49, %47, %51 : vector<8x256xi1>, vector<8x256xf32>
    %cst_23 = arith.constant 1.000000e+00 : f32
    %53 = vector.broadcast %cst_23 : f32 to vector<8x256xf32>
    %54 = arith.addf %53, %52 : vector<8x256xf32>
    %55 = arith.mulf %17, %54 : vector<8x256xf32>
    %56 = arith.truncf %55 : vector<8x256xf32> to vector<8x256xbf16>
    %c0_24 = arith.constant 0 : index
    %c0_25 = arith.constant 0 : index
    %57 = vector.load %arg5[%c0_24, %c0_25] : memref<256x256xbf16, #tpu.memory_space<vmem>>, vector<256x256xbf16>
    %cst_26 = arith.constant dense<0.000000e+00> : vector<8x256xf32>
    %58 = tpu.matmul %56, %57, %cst_26 {dimension_numbers = #tpu.dot_dimension_numbers<[1], [0], [0], [1], [0, 0, 1, 1], [], []>} : vector<8x256xbf16>, vector<256x256xbf16>, vector<8x256xf32> -> vector<8x256xf32>
    %c0_27 = arith.constant 0 : index
    %c0_28 = arith.constant 0 : index
    %59 = vector.load %arg6[%c0_27, %c0_28] : memref<256x256xbf16, #tpu.memory_space<vmem>>, vector<256x256xbf16>
    %cst_29 = arith.constant dense<0.000000e+00> : vector<8x256xf32>
    %60 = tpu.matmul %56, %59, %cst_29 {dimension_numbers = #tpu.dot_dimension_numbers<[1], [0], [0], [1], [0, 0, 1, 1], [], []>} : vector<8x256xbf16>, vector<256x256xbf16>, vector<8x256xf32> -> vector<8x256xf32>
    %c0_30 = arith.constant 0 : index
    %c0_31 = arith.constant 0 : index
    %61 = vector.load %arg7[%c0_30, %c0_31] : memref<8x8xf32, #tpu.memory_space<vmem>>, vector<8x8xf32>
    %cst_32 = arith.constant dense<0.000000e+00> : vector<8x256xf32>
    %62 = tpu.matmul %61, %60, %cst_32 {dimension_numbers = #tpu.dot_dimension_numbers<[1], [0], [0], [1], [0, 0, 1, 1], [], []>} : vector<8x8xf32>, vector<8x256xf32>, vector<8x256xf32> -> vector<8x256xf32>
    %63 = arith.addf %58, %62 : vector<8x256xf32>
    %c0_33 = arith.constant 0 : index
    %c0_34 = arith.constant 0 : index
    %64 = vector.load %arg8[%c0_33, %c0_34] : memref<1x256xf32, #tpu.memory_space<vmem>>, vector<1x256xf32>
    %65 = vector.broadcast %64 : vector<1x256xf32> to vector<8x256xf32>
    %66 = arith.addf %63, %65 : vector<8x256xf32>
    %c0_35 = arith.constant 0 : index
    %c0_36 = arith.constant 0 : index
    %67 = vector.load %arg9[%c0_35, %c0_36] : memref<8x256xf32, #tpu.memory_space<vmem>>, vector<8x256xf32>
    %68 = arith.addf %66, %67 : vector<8x256xf32>
    %c0_37 = arith.constant 0 : index
    %c0_38 = arith.constant 0 : index
    %69 = vector.load %arg10[%c0_37, %c0_38] : memref<8x256xf32, #tpu.memory_space<vmem>>, vector<8x256xf32>
    tpu.vector_store %arg10[%c0_37, %c0_38], %68 {strides = array<i32>} : memref<8x256xf32, #tpu.memory_space<vmem>>, vector<8x256xf32>,
    return
  }
  func.func @transform_0(%arg0: i32) -> (i32, i32) {
    %c0_i32 = arith.constant 0 : i32
    %c0_i32_0 = arith.constant 0 : i32
    return %arg0, %c0_i32 : i32, i32
  }
  func.func @transform_1(%arg0: i32) -> (i32, i32) {
    %c0_i32 = arith.constant 0 : i32
    %c0_i32_0 = arith.constant 0 : i32
    %c0_i32_1 = arith.constant 0 : i32
    return %c0_i32, %c0_i32_0 : i32, i32
  }
  func.func @transform_2(%arg0: i32) -> (i32, i32) {
    %c0_i32 = arith.constant 0 : i32
    %c0_i32_0 = arith.constant 0 : i32
    %c0_i32_1 = arith.constant 0 : i32
    return %c0_i32, %c0_i32_0 : i32, i32
  }
  func.func @transform_3(%arg0: i32) -> (i32, i32) {
    %c0_i32 = arith.constant 0 : i32
    %c0_i32_0 = arith.constant 0 : i32
    %c0_i32_1 = arith.constant 0 : i32
    return %c0_i32, %c0_i32_0 : i32, i32
  }
  func.func @transform_4(%arg0: i32) -> (i32, i32) {
    %c0_i32 = arith.constant 0 : i32
    %c0_i32_0 = arith.constant 0 : i32
    %c0_i32_1 = arith.constant 0 : i32
    return %c0_i32, %c0_i32_0 : i32, i32
  }
  func.func @transform_5(%arg0: i32) -> (i32, i32) {
    %c0_i32 = arith.constant 0 : i32
    %c0_i32_0 = arith.constant 0 : i32
    %c0_i32_1 = arith.constant 0 : i32
    return %c0_i32, %c0_i32_0 : i32, i32
  }
  func.func @transform_6(%arg0: i32) -> (i32, i32) {
    %c0_i32 = arith.constant 0 : i32
    %c0_i32_0 = arith.constant 0 : i32
    %c0_i32_1 = arith.constant 0 : i32
    return %c0_i32, %c0_i32_0 : i32, i32
  }
  func.func @transform_7(%arg0: i32) -> (i32, i32) {
    %c0_i32 = arith.constant 0 : i32
    %c0_i32_0 = arith.constant 0 : i32
    %c0_i32_1 = arith.constant 0 : i32
    return %c0_i32, %c0_i32_0 : i32, i32
  }
  func.func @transform_8(%arg0: i32) -> (i32, i32) {
    %c0_i32 = arith.constant 0 : i32
    %c0_i32_0 = arith.constant 0 : i32
    %c0_i32_1 = arith.constant 0 : i32
    return %c0_i32, %c0_i32_0 : i32, i32
  }
  func.func @transform_9(%arg0: i32) -> (i32, i32) {
    %c0_i32 = arith.constant 0 : i32
    %c0_i32_0 = arith.constant 0 : i32
    return %arg0, %c0_i32 : i32, i32
  }
}

</mosaic_0001>

<bundles_post_ra>
// kernel: tile.13
= control target key start
LH: loop header
LB: loop body
LE: loop exit
PB: predicated region body
PF: predicated region fallthrough
CT: control target
= control target key end

     0   :  { %s64_s0 = inlined_call_operand.vmem [shape: f32[4], index: 0, kind: input, shape index: {}]   ;;  %s65_s1 = inlined_call_operand.vmem [shape: f32[64,4], index: 1, kind: output, shape index: {}]  }
   0x1   :  { %v4_v0 = vld [vmem:[%s64_s0] ss:$0 sm:$0xff] }
   0x2   :  { %5 = vst [vmem:[%s65_s1] sm:$0xff] %v4_v0  ;;  %20 = vst [vmem:[%s65_s1 + $0x8] sm:$0xff] %v4_v0 }
   0x3   :  { %21 = vst [vmem:[%s65_s1 + $0x10] sm:$0xff] %v4_v0  ;;  %22 = vst [vmem:[%s65_s1 + $0x18] sm:$0xff] %v4_v0 }
   0x4   :  { %23 = vst [vmem:[%s65_s1 + $0x20] sm:$0xff] %v4_v0  ;;  %24 = vst [vmem:[%s65_s1 + $0x28] sm:$0xff] %v4_v0 }
   0x5   :  { %25 = vst [vmem:[%s65_s1 + $0x30] sm:$0xff] %v4_v0  ;;  %26 = vst [vmem:[%s65_s1 + $0x38] sm:$0xff] %v4_v0 }

// kernel: tile.14
= control target key start
LH: loop header
LB: loop body
LE: loop exit
PB: predicated region body
PF: predicated region fallthrough
CT: control target
= control target key end

     0   :  { %vm5_vm0 = vcmask 1041409   ;;  %s425_s14 = smov 124   ;;  %s426_s21 = smov 116   ;;  %vm7_vm1 = vcmask 31744   ;;  %vm17_vm2 = vcmask 1048544   ;;  %vm27_vm3 = vcmask 1015744   ;;  %s696_s0 = inlined_call_operand.vmem [shape: f32[64,4], index: 0, kind: input, shape index: {}]   ;;  %s697_s1 = inlined_call_operand.vmem [shape: f32[1,256], index: 1, kind: output, shape index: {}]  }
   0x1   :  { %v331_v0 = vld [vmem:[%s696_s0 + $0x1f] sm:$0x1]   ;;  %v335_v3 = vld [vmem:[%s696_s0 + $0x1d] sm:$0x1]   ;;  %v333_v6 = vld [vmem:[%s696_s0 + $0x1e] sm:$0x1]  }
   0x2   :  { %v332_v1 = vld [vmem:[%s696_s0 + $0x3e] sm:$0x2]   ;;  %v336_v4 = vld [vmem:[%s696_s0 + $0x3c] sm:$0x2]   ;;  %v334_v7 = vld [vmem:[%s696_s0 + $0x3d] sm:$0x2]  }
   0x3   :  { %v14_v2 = vsel %vm5_vm0, %v332_v1, %v331_v0  ;;  %v34_v5 = vsel %vm5_vm0, %v336_v4, %v335_v3  ;;  %v337_v8 = vld [vmem:[%s696_s0 + $0x1c] sm:$0x1]   ;;  %v24_v9 = vsel %vm5_vm0, %v334_v7, %v333_v6  ;;  %v339_v12 = vld [vmem:[%s696_s0 + $0x1b] sm:$0x1]   ;;  %v341_v14 = vld [vmem:[%s696_s0 + $0x1a] sm:$0x1]  }
   0x4   :  { %15 = vrot.lane.b32.xlu0 %v14_v2, %s425_s14  ;;  %35 = vrot.lane.b32.xlu1 %v34_v5, %s426_s21  ;;  %v338_v10 = vld [vmem:[%s696_s0 + $0x3b] sm:$0x2]   ;;  %v340_v13 = vld [vmem:[%s696_s0 + $0x3a] sm:$0x2]   ;;  %s427_s3 = smov 120   ;;  %s428_s4 = smov 112  }
   0x5   :  { %v44_v11 = vsel %vm5_vm0, %v338_v10, %v337_v8  ;;  %v342_v15 = vld [vmem:[%s696_s0 + $0x39] sm:$0x2]   ;;  %v54_v16 = vsel %vm5_vm0, %v340_v13, %v339_v12  ;;  %v343_v18 = vld [vmem:[%s696_s0 + $0x19] sm:$0x1]   ;;  %v345_v20 = vld [vmem:[%s696_s0 + $0x18] sm:$0x1]  }
   0x6   :  { %v64_v17 = vsel %vm5_vm0, %v342_v15, %v341_v14  ;;  %v344_v19 = vld [vmem:[%s696_s0 + $0x38] sm:$0x2]   ;;  %v346_v21 = vld [vmem:[%s696_s0 + $0x37] sm:$0x2]   ;;  %s429_s13 = smov 108   ;;  %s430_s14 = smov 104  }
   0x7   :  { %v74_v22 = vsel %vm5_vm0, %v344_v19, %v343_v18  ;;  %v84_v23 = vsel %vm5_vm0, %v346_v21, %v345_v20  ;;  %v347_v24 = vld [vmem:[%s696_s0 + $0x17] sm:$0x1]   ;;  %v349_v26 = vld [vmem:[%s696_s0 + $0x16] sm:$0x1]   ;;  %s431_s23 = smov 100   ;;  %s432_s24 = smov 96  }
   0x8   :  { %25 = vrot.lane.b32.xlu0 %v24_v9, %s427_s3  ;;  %45 = vrot.lane.b32.xlu1 %v44_v11, %s428_s4  ;;  %v348_v25 = vld [vmem:[%s696_s0 + $0x36] sm:$0x2]   ;;  %v350_v27 = vld [vmem:[%s696_s0 + $0x35] sm:$0x2]   ;;  %s433_s4 = smov 92   ;;  %s434_s5 = smov 88  }
   0x9   :  { %v94_v28 = vsel %vm5_vm0, %v348_v25, %v347_v24  ;;  %v104_v29 = vsel %vm5_vm0, %v350_v27, %v349_v26  ;;  %v351_v30 = vld [vmem:[%s696_s0 + $0x15] sm:$0x1]   ;;  %v353_v32 = vld [vmem:[%s696_s0 + $0x14] sm:$0x1]   ;;  %v355_v36 = vld [vmem:[%s696_s0 + $0x13] sm:$0x1]  }
   0xa   :  { %v352_v31 = vld [vmem:[%s696_s0 + $0x34] sm:$0x2]   ;;  %v354_v33 = vld [vmem:[%s696_s0 + $0x33] sm:$0x2]   ;;  %v356_v37 = vld [vmem:[%s696_s0 + $0x32] sm:$0x2]  }
   0xb   :  { %v114_v34 = vsel %vm5_vm0, %v352_v31, %v351_v30  ;;  %v124_v35 = vsel %vm5_vm0, %v354_v33, %v353_v32  ;;  %v357_v38 = vld [vmem:[%s696_s0 + $0x12] sm:$0x1]   ;;  %s436_s15 = smov 80   ;;  %v134_v40 = vsel %vm5_vm0, %v356_v37, %v355_v36  ;;  %v359_v42 = vld [vmem:[%s696_s0 + $0x11] sm:$0x1]   ;;  %s438_s29 = smov 72  }
   0xc   :  { %55 = vrot.lane.b32.xlu0 %v54_v16, %s429_s13  ;;  %65 = vrot.lane.b32.xlu1 %v64_v17, %s430_s14  ;;  %v358_v39 = vld [vmem:[%s696_s0 + $0x31] sm:$0x2]   ;;  %s435_s14 = smov 84   ;;  %v360_v43 = vld [vmem:[%s696_s0 + $0x30] sm:$0x2]   ;;  %s439_s9 = smov 68  }
   0xd   :  { %v144_v41 = vsel %vm5_vm0, %v358_v39, %v357_v38  ;;  %v361_v44 = vld [vmem:[%s696_s0 + $0x10] sm:$0x1]   ;;  %v2_v46 = vld [vmem:[%s696_s0] sm:$0x1]   ;;  %v154_v48 = vsel %vm5_vm0, %v360_v43, %v359_v42  ;;  %v363_v51 = vld [vmem:[%s696_s0 + $0xf] sm:$0x1]  }
   0xe   :  { %v362_v45 = vld [vmem:[%s696_s0 + $0x2f] sm:$0x2]   ;;  %v330_v47 = vld [vmem:[%s696_s0 + $0x1f] sm:$0x2]   ;;  %v364_v52 = vld [vmem:[%s696_s0 + $0x2e] sm:$0x2]  }
   0xf   :  { %v6_v49 = vsel %vm5_vm0, %v330_v47, %v2_v46  ;;  %v164_v50 = vsel %vm5_vm0, %v362_v45, %v361_v44  ;;  %v365_v53 = vld [vmem:[%s696_s0 + $0xe] sm:$0x1]   ;;  %s440_s10 = smov 64   ;;  %v174_v55 = vsel %vm5_vm0, %v364_v52, %v363_v51  ;;  %v367_v57 = vld [vmem:[%s696_s0 + $0xd] sm:$0x1]   ;;  %s441_s19 = smov 60  }
  0x10   :  { %75 = vrot.lane.b32.xlu0 %v74_v22, %s431_s23  ;;  %85 = vrot.lane.b32.xlu1 %v84_v23, %s432_s24  ;;  %s437_s24 = smov 76   ;;  %8 = vst.msk [vmem:[#allocation0] ss:$8 sm:$0x3] %vm7_vm1, %v6_v49   ;;  %v366_v54 = vld [vmem:[%s696_s0 + $0x2d] sm:$0x2]  }
  0x11   :  { %v184_v56 = vsel %vm5_vm0, %v366_v54, %v365_v53  ;;  %v368_v58 = vld [vmem:[%s696_s0 + $0x2c] sm:$0x2]   ;;  %v369_v59 = vld [vmem:[%s696_s0 + $0xc] sm:$0x1]   ;;  %s442_s20 = smov 56   ;;  %s444_s30 = smov 48  }
  0x12   :  { %v370_v60 = vld [vmem:[%s696_s0 + $0x2b] sm:$0x2]   ;;  %v194_v61 = vsel %vm5_vm0, %v368_v58, %v367_v57  ;;  %v371_v63 = vld [vmem:[%s696_s0 + $0xb] sm:$0x1]   ;;  %v373_v1 = vld [vmem:[%s696_s0 + $0xa] sm:$0x1]  }
  0x13   :  { %v204_v62 = vsel %vm5_vm0, %v370_v60, %v369_v59  ;;  %v372_v0 = vld [vmem:[%s696_s0 + $0x2a] sm:$0x2]   ;;  %v374_v2 = vld [vmem:[%s696_s0 + $0x29] sm:$0x2]   ;;  %v375_v5 = vld [vmem:[%s696_s0 + $0x9] sm:$0x1]  }
  0x14   :  { %95 = vrot.lane.b32.xlu0 %v94_v28, %s433_s4  ;;  %105 = vrot.lane.b32.xlu1 %v104_v29, %s434_s5  ;;  %v214_v3 = vsel %vm5_vm0, %v372_v0, %v371_v63  ;;  %v224_v4 = vsel %vm5_vm0, %v374_v2, %v373_v1  ;;  %v376_v6 = vld [vmem:[%s696_s0 + $0x28] sm:$0x2]   ;;  %v377_v7 = vld [vmem:[%s696_s0 + $0x8] sm:$0x1]   ;;  %s446_s11 = smov 40   ;;  %s448_s21 = smov 32  }
  0x15   :  { %v378_v8 = vld [vmem:[%s696_s0 + $0x27] sm:$0x2]   ;;  %v234_v9 = vsel %vm5_vm0, %v376_v6, %v375_v5  ;;  %v379_v11 = vld [vmem:[%s696_s0 + $0x7] sm:$0x1]   ;;  %v381_v13 = vld [vmem:[%s696_s0 + $0x6] sm:$0x1]  }
  0x16   :  { %v244_v10 = vsel %vm5_vm0, %v378_v8, %v377_v7  ;;  %v380_v12 = vld [vmem:[%s696_s0 + $0x26] sm:$0x2]   ;;  %v382_v14 = vld [vmem:[%s696_s0 + $0x25] sm:$0x2]   ;;  %v383_v17 = vld [vmem:[%s696_s0 + $0x5] sm:$0x1]  }
  0x17   :  { %v254_v15 = vsel %vm5_vm0, %v380_v12, %v379_v11  ;;  %v264_v16 = vsel %vm5_vm0, %v382_v14, %v381_v13  ;;  %v384_v18 = vld [vmem:[%s696_s0 + $0x24] sm:$0x2]   ;;  %v385_v19 = vld [vmem:[%s696_s0 + $0x4] sm:$0x1]   ;;  %s450_s2 = smov 24   ;;  %s452_s12 = smov 16  }
  0x18   :  { %115 = vrot.lane.b32.xlu0 %v114_v34, %s435_s14  ;;  %125 = vrot.lane.b32.xlu1 %v124_v35, %s436_s15  ;;  %v386_v20 = vld [vmem:[%s696_s0 + $0x23] sm:$0x2]   ;;  %v274_v21 = vsel %vm5_vm0, %v384_v18, %v383_v17  ;;  %v387_v23 = vld [vmem:[%s696_s0 + $0x3] sm:$0x1]   ;;  %s454_s17 = smov 8   ;;  %s455_s18 = smov 4  }
  0x19   :  { %v284_v22 = vsel %vm5_vm0, %v386_v20, %v385_v19  ;;  %v388_v24 = vld [vmem:[%s696_s0 + $0x22] sm:$0x2]   ;;  %v389_v25 = vld [vmem:[%s696_s0 + $0x2] sm:$0x1]   ;;  %v391_v29 = vld [vmem:[%s696_s0 + $0x1] sm:$0x1]  }
  0x1a   :  { %v390_v26 = vld [vmem:[%s696_s0 + $0x21] sm:$0x2]   ;;  %v294_v27 = vsel %vm5_vm0, %v388_v24, %v387_v23  ;;  %v392_v30 = vld [vmem:[%s696_s0 + $0x20] sm:$0x2]   ;;  %s453_s0 = smov 12   ;;  %vm37_vm4 = vcmask 982944  }
  0x1b   :  { %v304_v28 = vsel %vm5_vm0, %v390_v26, %v389_v25  ;;  %v314_v31 = vsel %vm5_vm0, %v392_v30, %v391_v29  ;;  %vm47_vm5 = vcmask 950144   ;;  %vm57_vm6 = vcmask 917344  }
  0x1c   :  { %135 = vrot.lane.b32.xlu0 %v134_v40, %s437_s24  ;;  %145 = vrot.lane.b32.xlu1 %v144_v41, %s438_s29  ;;  %s443_s29 = smov 52   ;;  %vm67_vm7 = vcmask 884544   ;;  %vm77_vm8 = vcmask 851744   ;;  %vm87_vm9 = vcmask 818944   ;;  %vm97_vm10 = vcmask 786144  }
  0x1d   :  { %vm107_vm11 = vcmask 753344   ;;  %vm117_vm12 = vcmask 720544   ;;  %vm127_vm13 = vcmask 687744   ;;  %vm137_vm14 = vcmask 654944  }
  0x1e   :  { %vm147_vm15 = vcmask 622144   ;;  %vm157_vm0 = vcmask 589344   ;;  %vm167_vm1 = vcmask 556544  }
  0x20   :  { %155 = vrot.lane.b32.xlu0 %v154_v48, %s439_s9  ;;  %165 = vrot.lane.b32.xlu1 %v164_v50, %s440_s10  ;;  %s445_s10 = smov 44  }
  0x24   :  { %175 = vrot.lane.b32.xlu0 %v174_v55, %s441_s19  ;;  %185 = vrot.lane.b32.xlu1 %v184_v56, %s442_s20  ;;  %s447_s20 = smov 36  }
  0x28   :  { %195 = vrot.lane.b32.xlu0 %v194_v61, %s443_s29  ;;  %205 = vrot.lane.b32.xlu1 %v204_v62, %s444_s30  ;;  %s449_s30 = smov 28  }
  0x2c   :  { %215 = vrot.lane.b32.xlu0 %v214_v3, %s445_s10  ;;  %225 = vrot.lane.b32.xlu1 %v224_v4, %s446_s11  ;;  %s451_s11 = smov 20  }
  0x30   :  { %235 = vrot.lane.b32.xlu0 %v234_v9, %s447_s20  ;;  %245 = vrot.lane.b32.xlu1 %v244_v10, %s448_s21 }
  0x34   :  { %255 = vrot.lane.b32.xlu0 %v254_v15, %s449_s30  ;;  %265 = vrot.lane.b32.xlu1 %v264_v16, %s450_s2 }
  0x38   :  { %275 = vrot.lane.b32.xlu0 %v274_v21, %s451_s11  ;;  %285 = vrot.lane.b32.xlu1 %v284_v22, %s452_s12 }
  0x3c   :  { %295 = vrot.lane.b32.xlu0 %v294_v27, %s453_s0  ;;  %305 = vrot.lane.b32.xlu1 %v304_v28, %s454_s17 }
  0x40   :  { %315 = vrot.lane.b32.xlu0 %v314_v31, %s455_s18 }
  0x76   :  { %v16_v32 = vpop.permute.xlu0 %15   ;;  %v36_v33 = vpop.permute.xlu1 %35  }
  0x77   :  { %18 = vst.msk [vmem:[#allocation0] ss:$8 sm:$0x3] %vm17_vm2, %v16_v32   ;;  %vm177_vm2 = vcmask 523744  }
  0x7a   :  { %v26_v34 = vpop.permute.xlu0 %25   ;;  %v46_v35 = vpop.permute.xlu1 %45  }
  0x7b   :  { %28 = vst.msk [vmem:[#allocation0] ss:$8 sm:$0x3] %vm27_vm3, %v26_v34   ;;  %vm187_vm3 = vcmask 490944  }
  0x7c   :  { %38 = vst.msk [vmem:[#allocation0] ss:$8 sm:$0x3] %vm37_vm4, %v36_v33   ;;  %vm197_vm4 = vcmask 458144  }
  0x7d   :  { %48 = vst.msk [vmem:[#allocation0] ss:$8 sm:$0x3] %vm47_vm5, %v46_v35   ;;  %vm207_vm5 = vcmask 425344  }
  0x7e   :  { %v56_v36 = vpop.permute.xlu0 %55   ;;  %v66_v37 = vpop.permute.xlu1 %65  }
  0x7f   :  { %58 = vst.msk [vmem:[#allocation0] ss:$8 sm:$0x3] %vm57_vm6, %v56_v36   ;;  %vm217_vm6 = vcmask 392544  }
  0x80   :  { %68 = vst.msk [vmem:[#allocation0] ss:$8 sm:$0x3] %vm67_vm7, %v66_v37   ;;  %vm227_vm7 = vcmask 359744  }
  0x82   :  { %v76_v38 = vpop.permute.xlu0 %75   ;;  %v86_v39 = vpop.permute.xlu1 %85  }
  0x83   :  { %78 = vst.msk [vmem:[#allocation0] ss:$8 sm:$0x3] %vm77_vm8, %v76_v38   ;;  %vm237_vm8 = vcmask 326944  }
  0x84   :  { %88 = vst.msk [vmem:[#allocation0] ss:$8 sm:$0x3] %vm87_vm9, %v86_v39   ;;  %vm247_vm9 = vcmask 294144  }
  0x86   :  { %v96_v40 = vpop.permute.xlu0 %95   ;;  %v106_v41 = vpop.permute.xlu1 %105  }
  0x87   :  { %98 = vst.msk [vmem:[#allocation0] ss:$8 sm:$0x3] %vm97_vm10, %v96_v40   ;;  %vm257_vm10 = vcmask 261344  }
  0x88   :  { %108 = vst.msk [vmem:[#allocation0] ss:$8 sm:$0x3] %vm107_vm11, %v106_v41   ;;  %vm267_vm11 = vcmask 228544  }
  0x8a   :  { %v116_v42 = vpop.permute.xlu0 %115   ;;  %v126_v43 = vpop.permute.xlu1 %125  }
  0x8b   :  { %118 = vst.msk [vmem:[#allocation0] ss:$8 sm:$0x3] %vm117_vm12, %v116_v42   ;;  %vm277_vm12 = vcmask 195744  }
  0x8c   :  { %128 = vst.msk [vmem:[#allocation0] ss:$8 sm:$0x3] %vm127_vm13, %v126_v43   ;;  %vm287_vm13 = vcmask 162944  }
  0x8e   :  { %v136_v44 = vpop.permute.xlu0 %135   ;;  %v146_v45 = vpop.permute.xlu1 %145  }
  0x8f   :  { %138 = vst.msk [vmem:[#allocation0] ss:$8 sm:$0x3] %vm137_vm14, %v136_v44   ;;  %vm297_vm14 = vcmask 130144  }
  0x90   :  { %148 = vst.msk [vmem:[#allocation0] ss:$8 sm:$0x3] %vm147_vm15, %v146_v45   ;;  %vm307_vm15 = vcmask 97344  }
  0x92   :  { %v156_v46 = vpop.permute.xlu0 %155   ;;  %v166_v47 = vpop.permute.xlu1 %165  }
  0x93   :  { %158 = vst.msk [vmem:[#allocation0] ss:$8 sm:$0x3] %vm157_vm0, %v156_v46   ;;  %vm317_vm0 = vcmask 64544  }
  0x94   :  { %168 = vst.msk [vmem:[#allocation0] ss:$8 sm:$0x3] %vm167_vm1, %v166_v47  }
  0x96   :  { %v176_v48 = vpop.permute.xlu0 %175   ;;  %v186_v49 = vpop.permute.xlu1 %185  }
  0x97   :  { %178 = vst.msk [vmem:[#allocation0] ss:$8 sm:$0x3] %vm177_vm2, %v176_v48  }
  0x98   :  { %188 = vst.msk [vmem:[#allocation0] ss:$8 sm:$0x3] %vm187_vm3, %v186_v49  }
  0x9a   :  { %v196_v50 = vpop.permute.xlu0 %195   ;;  %v206_v51 = vpop.permute.xlu1 %205  }
  0x9b   :  { %198 = vst.msk [vmem:[#allocation0] ss:$8 sm:$0x3] %vm197_vm4, %v196_v50  }
  0x9c   :  { %208 = vst.msk [vmem:[#allocation0] ss:$8 sm:$0x3] %vm207_vm5, %v206_v51  }
  0x9e   :  { %v216_v52 = vpop.permute.xlu0 %215   ;;  %v226_v53 = vpop.permute.xlu1 %225  }
  0x9f   :  { %218 = vst.msk [vmem:[#allocation0] ss:$8 sm:$0x3] %vm217_vm6, %v216_v52  }
  0xa0   :  { %228 = vst.msk [vmem:[#allocation0] ss:$8 sm:$0x3] %vm227_vm7, %v226_v53  }
  0xa2   :  { %v236_v54 = vpop.permute.xlu0 %235   ;;  %v246_v55 = vpop.permute.xlu1 %245  }
  0xa3   :  { %238 = vst.msk [vmem:[#allocation0] ss:$8 sm:$0x3] %vm237_vm8, %v236_v54  }
  0xa4   :  { %248 = vst.msk [vmem:[#allocation0] ss:$8 sm:$0x3] %vm247_vm9, %v246_v55  }
  0xa6   :  { %v256_v56 = vpop.permute.xlu0 %255   ;;  %v266_v57 = vpop.permute.xlu1 %265  }
  0xa7   :  { %258 = vst.msk [vmem:[#allocation0] ss:$8 sm:$0x3] %vm257_vm10, %v256_v56  }
  0xa8   :  { %268 = vst.msk [vmem:[#allocation0] ss:$8 sm:$0x3] %vm267_vm11, %v266_v57  }
  0xaa   :  { %v276_v58 = vpop.permute.xlu0 %275   ;;  %v286_v59 = vpop.permute.xlu1 %285  }
  0xab   :  { %278 = vst.msk [vmem:[#allocation0] ss:$8 sm:$0x3] %vm277_vm12, %v276_v58  }
  0xac   :  { %288 = vst.msk [vmem:[#allocation0] ss:$8 sm:$0x3] %vm287_vm13, %v286_v59  }
  0xae   :  { %v296_v60 = vpop.permute.xlu0 %295   ;;  %v306_v61 = vpop.permute.xlu1 %305  }
  0xaf   :  { %298 = vst.msk [vmem:[#allocation0] ss:$8 sm:$0x3] %vm297_vm14, %v296_v60  }
  0xb0   :  { %308 = vst.msk [vmem:[#allocation0] ss:$8 sm:$0x3] %vm307_vm15, %v306_v61  }
  0xb2   :  { %v316_v62 = vpop.permute.xlu0 %315  }
  0xb3   :  { %318 = vst.msk [vmem:[#allocation0] ss:$8 sm:$0x3] %vm317_vm0, %v316_v62  }
  0xba   :  { %v322_v63 = vld [vmem:[#allocation0] sm:$0x1]  ;;  %v326_v0 = vld [vmem:[#allocation0 + $0x8] sm:$0x1] }
  0xbb   :  { %324 = vst [vmem:[%s697_s1] sm:$0x1] %v322_v63  ;;  %393 = vst [vmem:[%s697_s1 + $0x1] sm:$0x1] %v326_v0 }

// kernel: sparse_mlp_forward.1
= control target key start
LH: loop header
LB: loop body
LE: loop exit
PB: predicated region body
PF: predicated region fallthrough
CT: control target
= control target key end

     0   :  { %s1632_s30 = smov 0   ;;  %s2094_s0 = inlined_call_operand.vmem [shape: f32[16,256], index: 0, kind: input, shape index: {}]   ;;  %s2095_s1 = inlined_call_operand.vmem [shape: f32[256,256], index: 1, kind: input, shape index: {}]   ;;  %s2096_s2 = inlined_call_operand.vmem [shape: f32[1,256], index: 2, kind: input, shape index: {}]   ;;  %s2097_s3 = inlined_call_operand.vmem [shape: f32[1,256], index: 3, kind: input, shape index: {}]   ;;  %s2098_s4 = inlined_call_operand.vmem [shape: bf16[256,256], index: 4, kind: input, shape index: {}]   ;;  %s2099_s5 = inlined_call_operand.vmem [shape: bf16[256,256], index: 5, kind: input, shape index: {}]   ;;  %s2100_s6 = inlined_call_operand.vmem [shape: f32[8,8], index: 6, kind: input, shape index: {}]   ;;  %s2101_s7 = inlined_call_operand.vmem [shape: f32[1,256], index: 7, kind: input, shape index: {}]   ;;  %s2102_s8 = inlined_call_operand.vmem [shape: f32[8,256], index: 8, kind: input, shape index: {}]   ;;  %s2103_s9 = inlined_call_operand.vmem [shape: f32[16,256], index: 9, kind: output, shape index: {}]  }
   0x1 LB: > { %s1250_s10 = sadd.s32 4294967295, %s1579_s30   ;;  %p1254_p0 = scmp.ge.s32.totalorder %s1579_s30, 1  ;;  %s1579_s30 = sphi %s1632_s30, %s19_s30  }
   0x2   : > { %p287_p1 = scmp.lt.s32.totalorder %s1579_s30, 3 }
   0x4   : > { %p288_p2 = pnand %p1254_p0, %p287_p1 }
   0x5   : > { %v336_v0 = vld [vmem:[%s2095_s1 + $0x8] sm:$0xff] (!%p288_p2)  ;;  %v338_v1 = vld [vmem:[%s2095_s1 + $0x18] sm:$0xff] (!%p288_p2)  ;;  %v335_v2 = vld [vmem:[%s2095_s1] sm:$0xff] (!%p288_p2)  ;;  %p323_p3 = scmp.lt.s32.totalorder (!%p288_p2), %s1250_s10, 1  ;;  %vm899_vm2 = vcmask (!%p288_p2), 64512  }
   0x6   : > { %291 = sbr.rel (%p288_p2) target bundleno = 1072 (0x430), region = 56  ;;  %v1328_v3 = vpack.c.bf16 (!%p288_p2), %v338_v1, %v336_v0  ;;  %v337_v4 = vld [vmem:[%s2095_s1 + $0x10] sm:$0xff] (!%p288_p2)  ;;  %v340_v5 = vld [vmem:[%s2095_s1 + $0x28] sm:$0xff] (!%p288_p2)  ;;  %v342_v6 = vld [vmem:[%s2095_s1 + $0x38] sm:$0xff] (!%p288_p2) }
   0x7   : > { %v1330_v7 = vpack.c.bf16 (!%p288_p2), %v337_v4, %v335_v2  ;;  %v1332_v8 = vpack.c.bf16 (!%p288_p2), %v342_v6, %v340_v5  ;;  %v339_v9 = vld [vmem:[%s2095_s1 + $0x20] sm:$0xff] (!%p288_p2)  ;;  %v341_v10 = vld [vmem:[%s2095_s1 + $0x30] sm:$0xff] (!%p288_p2)  ;;  %v344_v11 = vld [vmem:[%s2095_s1 + $0x48] sm:$0xff] (!%p288_p2) }
   0x8   : > { %1329 = vmatprep.subr.bf16.mxu0 (!%p288_p2), %v1328_v3  ;;  %v346_v12 = vld [vmem:[%s2095_s1 + $0x58] sm:$0xff] (!%p288_p2)  ;;  %1393 = vmatprep.subr.bf16.mxu1 (!%p288_p2), %v1328_v3  ;;  %v1334_v13 = vpack.c.bf16 (!%p288_p2), %v341_v10, %v339_v9  ;;  %v343_v15 = vld [vmem:[%s2095_s1 + $0x40] sm:$0xff] (!%p288_p2)  ;;  %v345_v16 = vld [vmem:[%s2095_s1 + $0x50] sm:$0xff] (!%p288_p2) }
   0x9   : > { %1331 = vmatpush1.bf16.msra.mxu0 (!%p288_p2), %v1330_v7  ;;  %1395 = vmatpush1.bf16.msra.mxu1 (!%p288_p2), %v1330_v7  ;;  %v1336_v14 = vpack.c.bf16 (!%p288_p2), %v346_v12, %v344_v11  ;;  %v348_v17 = vld [vmem:[%s2095_s1 + $0x68] sm:$0xff] (!%p288_p2)  ;;  %v350_v18 = vld [vmem:[%s2095_s1 + $0x78] sm:$0xff] (!%p288_p2)  ;;  %v1338_v19 = vpack.c.bf16 (!%p288_p2), %v345_v16, %v343_v15  ;;  %v347_v21 = vld [vmem:[%s2095_s1 + $0x60] sm:$0xff] (!%p288_p2) }
   0xa   : > { %1333 = vmatprep.subr.bf16.mxu0 (!%p288_p2), %v1332_v8  ;;  %1397 = vmatprep.subr.bf16.mxu1 (!%p288_p2), %v1332_v8  ;;  %v1340_v20 = vpack.c.bf16 (!%p288_p2), %v350_v18, %v348_v17  ;;  %v349_v22 = vld [vmem:[%s2095_s1 + $0x70] sm:$0xff] (!%p288_p2)  ;;  %v352_v23 = vld [vmem:[%s2095_s1 + $0x88] sm:$0xff] (!%p288_p2)  ;;  %v354_v24 = vld [vmem:[%s2095_s1 + $0x98] sm:$0xff] (!%p288_p2) }
   0xb   : > { %v1342_v25 = vpack.c.bf16 (!%p288_p2), %v349_v22, %v347_v21  ;;  %v1344_v26 = vpack.c.bf16 (!%p288_p2), %v354_v24, %v352_v23  ;;  %v351_v27 = vld [vmem:[%s2095_s1 + $0x80] sm:$0xff] (!%p288_p2)  ;;  %v353_v28 = vld [vmem:[%s2095_s1 + $0x90] sm:$0xff] (!%p288_p2)  ;;  %v356_v29 = vld [vmem:[%s2095_s1 + $0xa8] sm:$0xff] (!%p288_p2) }
   0xc   : > { %v358_v30 = vld [vmem:[%s2095_s1 + $0xb8] sm:$0xff] (!%p288_p2)  ;;  %v1346_v31 = vpack.c.bf16 (!%p288_p2), %v353_v28, %v351_v27  ;;  %v355_v33 = vld [vmem:[%s2095_s1 + $0xa0] sm:$0xff] (!%p288_p2)  ;;  %v357_v34 = vld [vmem:[%s2095_s1 + $0xb0] sm:$0xff] (!%p288_p2) }
   0xd   : > { %1335 = vmatpush1.bf16.msra.mxu0 %v1334_v13  ;;  %1399 = vmatpush1.bf16.msra.mxu1 %v1334_v13  ;;  %s2105_s10 = smov (!%p323_p3, %s1250_s10), 1  ;;  %v1348_v32 = vpack.c.bf16 %v358_v30, %v356_v29  ;;  %v360_v35 = vld [vmem:[%s2095_s1 + $0xc8] sm:$0xff]  ;;  %v362_v36 = vld [vmem:[%s2095_s1 + $0xd8] sm:$0xff]  ;;  %v1350_v37 = vpack.c.bf16 %v357_v34, %v355_v33  ;;  %v359_v38 = vld [vmem:[%s2095_s1 + $0xc0] sm:$0xff] }
   0xe   : > { %1337 = vmatprep.subr.bf16.mxu0 %v1336_v14  ;;  %1401 = vmatprep.subr.bf16.mxu1 %v1336_v14  ;;  %s1326_s17 = sshll.u32 %s2105_s10, 4  ;;  %v361_v39 = vld [vmem:[%s2095_s1 + $0xd0] sm:$0xff]  ;;  %v1352_v40 = vpack.c.bf16 %v362_v36, %v360_v35  ;;  %v364_v41 = vld [vmem:[%s2095_s1 + $0xe8] sm:$0xff]  ;;  %v366_v42 = vld [vmem:[%s2095_s1 + $0xf8] sm:$0xff] }
   0xf   : > { %s1730_s28 = scalar_lea.vmem %s2094_s0, %s1326_s17  ;;  %v363_v44 = vld [vmem:[%s2095_s1 + $0xe0] sm:$0xff]  ;;  %v365_v45 = vld [vmem:[%s2095_s1 + $0xf0] sm:$0xff]  ;;  %v1354_v46 = vpack.c.bf16 %v361_v39, %v359_v38  ;;  %v368_v47 = vld [vmem:[%s2095_s1 + $0x108] sm:$0xff]  ;;  %v1356_v49 = vpack.c.bf16 %v366_v42, %v364_v41  ;;  %s332_s16 = scalar_lea.vmem %s2103_s9, %s1326_s17 }
  0x10   : > { %v1745_v43 = vld [vmem:[%s1730_s28 + $0x8] sm:$0xff]  ;;  %v370_v48 = vld [vmem:[%s2095_s1 + $0x118] sm:$0xff]  ;;  %v367_v50 = vld [vmem:[%s2095_s1 + $0x100] sm:$0xff]  ;;  %v1358_v52 = vpack.c.bf16 %v365_v45, %v363_v44 }
  0x11   : > { %1339 = vmatpush1.bf16.msra.mxu0 %v1338_v19  ;;  %1403 = vmatpush1.bf16.msra.mxu1 %v1338_v19  ;;  %v369_v51 = vld [vmem:[%s2095_s1 + $0x110] sm:$0xff]  ;;  %v372_v53 = vld [vmem:[%s2095_s1 + $0x128] sm:$0xff]  ;;  %v374_v54 = vld [vmem:[%s2095_s1 + $0x138] sm:$0xff]  ;;  %v1360_v55 = vpack.c.bf16 %v370_v48, %v368_v47 }
  0x12   : > { %1341 = vmatprep.subr.bf16.mxu0 %v1340_v20  ;;  %1405 = vmatprep.subr.bf16.mxu1 %v1340_v20  ;;  %v371_v56 = vld [vmem:[%s2095_s1 + $0x120] sm:$0xff]  ;;  %v373_v57 = vld [vmem:[%s2095_s1 + $0x130] sm:$0xff]  ;;  %v1362_v58 = vpack.c.bf16 %v369_v51, %v367_v50  ;;  %v376_v59 = vld [vmem:[%s2095_s1 + $0x148] sm:$0xff]  ;;  %v1364_v61 = vpack.c.bf16 %v374_v54, %v372_v53 }
  0x13   : > { %463 = vmatprep.mubr.f32.mxu0 %v1745_v43  ;;  %v378_v60 = vld [vmem:[%s2095_s1 + $0x158] sm:$0xff]  ;;  %v375_v62 = vld [vmem:[%s2095_s1 + $0x140] sm:$0xff]  ;;  %v377_v63 = vld [vmem:[%s2095_s1 + $0x150] sm:$0xff]  ;;  %v1366_v0 = vpack.c.bf16 %v373_v57, %v371_v56 }
  0x14   : > { %v380_v1 = vld [vmem:[%s2095_s1 + $0x168] sm:$0xff]  ;;  %v382_v2 = vld [vmem:[%s2095_s1 + $0x178] sm:$0xff]  ;;  %v1368_v3 = vpack.c.bf16 %v378_v60, %v376_v59  ;;  %v379_v4 = vld [vmem:[%s2095_s1 + $0x160] sm:$0xff]  ;;  %v1370_v6 = vpack.c.bf16 %v377_v63, %v375_v62 }
  0x15   : > { %1343 = vmatpush1.bf16.msra.mxu0 %v1342_v25  ;;  %1407 = vmatpush1.bf16.msra.mxu1 %v1342_v25  ;;  %v381_v5 = vld [vmem:[%s2095_s1 + $0x170] sm:$0xff]  ;;  %v384_v7 = vld [vmem:[%s2095_s1 + $0x188] sm:$0xff]  ;;  %v386_v8 = vld [vmem:[%s2095_s1 + $0x198] sm:$0xff]  ;;  %v1372_v9 = vpack.c.bf16 %v382_v2, %v380_v1 }
  0x16   : > { %1345 = vmatprep.subr.bf16.mxu0 %v1344_v26  ;;  %1409 = vmatprep.subr.bf16.mxu1 %v1344_v26  ;;  %v1374_v10 = vpack.c.bf16 %v381_v5, %v379_v4  ;;  %v1376_v11 = vpack.c.bf16 %v386_v8, %v384_v7  ;;  %v383_v12 = vld [vmem:[%s2095_s1 + $0x180] sm:$0xff]  ;;  %v385_v13 = vld [vmem:[%s2095_s1 + $0x190] sm:$0xff]  ;;  %v388_v14 = vld [vmem:[%s2095_s1 + $0x1a8] sm:$0xff] }
  0x17   : > { %v390_v15 = vld [vmem:[%s2095_s1 + $0x1b8] sm:$0xff]  ;;  %v1378_v16 = vpack.c.bf16 %v385_v13, %v383_v12  ;;  %v387_v18 = vld [vmem:[%s2095_s1 + $0x1a0] sm:$0xff]  ;;  %v389_v19 = vld [vmem:[%s2095_s1 + $0x1b0] sm:$0xff] }
  0x18   : > { %v1380_v17 = vpack.c.bf16 %v390_v15, %v388_v14  ;;  %v392_v20 = vld [vmem:[%s2095_s1 + $0x1c8] sm:$0xff]  ;;  %v394_v21 = vld [vmem:[%s2095_s1 + $0x1d8] sm:$0xff]  ;;  %v1382_v22 = vpack.c.bf16 %v389_v19, %v387_v18  ;;  %v391_v24 = vld [vmem:[%s2095_s1 + $0x1c0] sm:$0xff] }
  0x19   : > { %1347 = vmatpush1.bf16.msra.mxu0 %v1346_v31  ;;  %1411 = vmatpush1.bf16.msra.mxu1 %v1346_v31  ;;  %v1384_v23 = vpack.c.bf16 %v394_v21, %v392_v20  ;;  %v393_v25 = vld [vmem:[%s2095_s1 + $0x1d0] sm:$0xff]  ;;  %v396_v26 = vld [vmem:[%s2095_s1 + $0x1e8] sm:$0xff]  ;;  %v398_v27 = vld [vmem:[%s2095_s1 + $0x1f8] sm:$0xff] }
  0x1a   : > { %1349 = vmatprep.subr.bf16.mxu0 %v1348_v32  ;;  %1413 = vmatprep.subr.bf16.mxu1 %v1348_v32  ;;  %v1386_v28 = vpack.c.bf16 %v393_v25, %v391_v24  ;;  %v1388_v29 = vpack.c.bf16 %v398_v27, %v396_v26  ;;  %v395_v30 = vld [vmem:[%s2095_s1 + $0x1e0] sm:$0xff]  ;;  %v397_v31 = vld [vmem:[%s2095_s1 + $0x1f0] sm:$0xff] }
  0x1b   : > { %v1390_v32 = vpack.c.bf16 %v397_v31, %v395_v30  ;;  %v333_v33 = vld [vmem:[%s1730_s28] sm:$0xff]  ;;  %v1470_v42 = vld [vmem:[%s2099_s5 + $0x14] ss:$8 sps:$4 sm:$0xff]   ;;  %v1474_v47 = vld [vmem:[%s2099_s5 + $0x30] ss:$8 sps:$4 sm:$0xff]  }
  0x1c   : > { %v1465_v41 = vld [vmem:[%s2099_s5] ss:$8 sps:$4 sm:$0xff]   ;;  %v1473_v44 = vld [vmem:[%s2099_s5 + $0x24] ss:$8 sps:$4 sm:$0xff]   ;;  %v1482_v50 = vld [vmem:[%s2099_s5 + $0x54] ss:$8 sps:$4 sm:$0xff]  }
  0x1d   : > { %1351 = vmatpush1.bf16.msra.mxu0 %v1350_v37  ;;  %1415 = vmatpush1.bf16.msra.mxu1 %v1350_v37  ;;  %v1471_v45 = vld [vmem:[%s2099_s5 + $0x20] ss:$8 sps:$4 sm:$0xff]   ;;  %v1479_v48 = vld [vmem:[%s2099_s5 + $0x44] ss:$8 sps:$4 sm:$0xff]   ;;  %v1480_v51 = vld [vmem:[%s2099_s5 + $0x50] ss:$8 sps:$4 sm:$0xff]  }
  0x1e   : > { %1353 = vmatprep.subr.bf16.mxu0 %v1352_v40  ;;  %1417 = vmatprep.subr.bf16.mxu1 %v1352_v40  ;;  %v1467_v40 = vld [vmem:[%s2099_s5 + $0x4] ss:$8 sps:$4 sm:$0xff]   ;;  %v1483_v53 = vld [vmem:[%s2099_s5 + $0x60] ss:$8 sps:$4 sm:$0xff]   ;;  %v1488_v54 = vld [vmem:[%s2099_s5 + $0x74] ss:$8 sps:$4 sm:$0xff]  }
  0x1f   : > { %v1491_v56 = vld [vmem:[%s2099_s5 + $0x84] ss:$8 sps:$4 sm:$0xff]   ;;  %v1489_v57 = vld [vmem:[%s2099_s5 + $0x80] ss:$8 sps:$4 sm:$0xff]   ;;  %v1492_v59 = vld [vmem:[%s2099_s5 + $0x90] ss:$8 sps:$4 sm:$0xff]  }
  0x20   : > { %v1497_v60 = vld [vmem:[%s2099_s5 + $0xa4] ss:$8 sps:$4 sm:$0xff]   ;;  %v1500_v62 = vld [vmem:[%s2099_s5 + $0xb4] ss:$8 sps:$4 sm:$0xff]   ;;  %v1498_v63 = vld [vmem:[%s2099_s5 + $0xb0] ss:$8 sps:$4 sm:$0xff]  }
  0x21   : > { %1355 = vmatpush1.bf16.msra.mxu0 %v1354_v46  ;;  %1419 = vmatpush1.bf16.msra.mxu1 %v1354_v46  ;;  %v1476_v46 = vld [vmem:[%s2099_s5 + $0x34] ss:$8 sps:$4 sm:$0xff]   ;;  %v1501_v1 = vld [vmem:[%s2099_s5 + $0xc0] ss:$8 sps:$4 sm:$0xff]   ;;  %v1509_v4 = vld [vmem:[%s2099_s5 + $0xe4] ss:$8 sps:$4 sm:$0xff]  }
  0x22   : > { %1357 = vmatprep.subr.bf16.mxu0 %v1356_v49  ;;  %1421 = vmatprep.subr.bf16.mxu1 %v1356_v49  ;;  %v1477_v49 = vld [vmem:[%s2099_s5 + $0x40] ss:$8 sps:$4 sm:$0xff]   ;;  %v1506_v2 = vld [vmem:[%s2099_s5 + $0xd4] ss:$8 sps:$4 sm:$0xff]   ;;  %v1510_v7 = vld [vmem:[%s2099_s5 + $0xf0] ss:$8 sps:$4 sm:$0xff]  }
  0x23   : > { %v1507_v5 = vld [vmem:[%s2099_s5 + $0xe0] ss:$8 sps:$4 sm:$0xff]  }
  0x24   : > { %v549_v15 = vld [vmem:[%s2096_s2] sm:$0x3] }
  0x25   : > { %1359 = vmatpush1.bf16.msra.mxu0 %v1358_v52  ;;  %1423 = vmatpush1.bf16.msra.mxu1 %v1358_v52  ;;  %v1485_v52 = vld [vmem:[%s2099_s5 + $0x64] ss:$8 sps:$4 sm:$0xff]  }
  0x26   : > { %1361 = vmatprep.subr.bf16.mxu0 %v1360_v55  ;;  %1425 = vmatprep.subr.bf16.mxu1 %v1360_v55  ;;  %v1486_v55 = vld [vmem:[%s2099_s5 + $0x70] ss:$8 sps:$4 sm:$0xff]  }
  0x29   : > { %1363 = vmatpush1.bf16.msra.mxu0 %v1362_v58  ;;  %1427 = vmatpush1.bf16.msra.mxu1 %v1362_v58  ;;  %v1494_v58 = vld [vmem:[%s2099_s5 + $0x94] ss:$8 sps:$4 sm:$0xff]  }
  0x2a   : > { %1365 = vmatprep.subr.bf16.mxu0 %v1364_v61  ;;  %1429 = vmatprep.subr.bf16.mxu1 %v1364_v61  ;;  %v1495_v61 = vld [vmem:[%s2099_s5 + $0xa0] ss:$8 sps:$4 sm:$0xff]  }
  0x2d   : > { %1367 = vmatpush1.bf16.msra.mxu0 %v1366_v0  ;;  %1431 = vmatpush1.bf16.msra.mxu1 %v1366_v0  ;;  %v1503_v0 = vld [vmem:[%s2099_s5 + $0xc4] ss:$8 sps:$4 sm:$0xff]  }
  0x2e   : > { %1369 = vmatprep.subr.bf16.mxu0 %v1368_v3  ;;  %1433 = vmatprep.subr.bf16.mxu1 %v1368_v3  ;;  %v1504_v3 = vld [vmem:[%s2099_s5 + $0xd0] ss:$8 sps:$4 sm:$0xff]  }
  0x31   : > { %1371 = vmatpush1.bf16.msra.mxu0 %v1370_v6  ;;  %1435 = vmatpush1.bf16.msra.mxu1 %v1370_v6  ;;  %v1512_v6 = vld [vmem:[%s2099_s5 + $0xf4] ss:$8 sps:$4 sm:$0xff]  }
  0x32   : > { %1373 = vmatprep.subr.bf16.mxu0 %v1372_v9  ;;  %1437 = vmatprep.subr.bf16.mxu1 %v1372_v9  ;;  %v551_v9 = vlaneseq }
  0x34   : > { %v552_v13 = vshrl.u32 %v551_v9, 7 }
  0x35   : > { %1375 = vmatpush1.bf16.msra.mxu0 %v1374_v10  ;;  %1439 = vmatpush1.bf16.msra.mxu1 %v1374_v10 }
  0x36   : > { %1377 = vmatprep.subr.bf16.mxu0 %v1376_v11  ;;  %1441 = vmatprep.subr.bf16.mxu1 %v1376_v11  ;;  %v1956_v14 = vsub.s32 0, %v552_v13 }
  0x38   : > { %v554_v18 = vrot.slane %v549_v15, %v1956_v14 }
  0x39   : > { %1379 = vmatpush1.bf16.msra.mxu0 %v1378_v16  ;;  %1443 = vmatpush1.bf16.msra.mxu1 %v1378_v16  ;;  %v1961_v16 = vsub.s32 1, %v552_v13 }
  0x3a   : > { %1381 = vmatprep.subr.bf16.mxu0 %v1380_v17  ;;  %1445 = vmatprep.subr.bf16.mxu1 %v1380_v17  ;;  %v563_v17 = vld [vmem:[%s2097_s3] sm:$0x3] }
  0x3b   : > { %v558_v20 = vrot.slane %v549_v15, %v1961_v16  ;;  %v572_v25 = vrot.slane %v563_v17, %v1961_v16 }
  0x3d   : > { %1383 = vmatpush1.bf16.msra.mxu0 %v1382_v22  ;;  %1447 = vmatpush1.bf16.msra.mxu1 %v1382_v22 }
  0x3e   : > { %1385 = vmatprep.subr.bf16.mxu0 %v1384_v23  ;;  %1449 = vmatprep.subr.bf16.mxu1 %v1384_v23  ;;  %v568_v23 = vrot.slane %v563_v17, %v1956_v14 }
  0x41   : > { %1387 = vmatpush1.bf16.msra.mxu0 %v1386_v28  ;;  %1451 = vmatpush1.bf16.msra.mxu1 %v1386_v28 }
  0x42   : > { %1389 = vmatprep.subr.bf16.mxu0 %v1388_v29  ;;  %1453 = vmatprep.subr.bf16.mxu1 %v1388_v29 }
  0x45   : > { %1391 = vmatpush1.bf16.msra.mxu0 %v1390_v32  ;;  %1455 = vmatpush1.bf16.msra.mxu1 %v1390_v32 }
  0x46   : > { %857 = vmatprep.subr.bf16.mxu0 %v1467_v40 }
  0x48   : > { %464 = vmatmul.mubr.f32.vlgmr.msra.gmra.mrb[0].mxu0 %v333_v33 }
  0x49   : > { %858 = vmatpush1.bf16.msra.mxu0 %v1465_v41 }
  0x4a   : > { %859 = vmatprep.subr.bf16.mxu0 %v1470_v42 }
 0x11b   : > { %v465_v34 = vpop.f32.mrb[0].mxu0 }
 0x11c   : > { %v1851_v35 = vsub.f32 %v333_v33, %v465_v34  ;;  %v467_v36 = vpop.f32.mrb[1].mxu0 }
 0x11d   : > { %v1854_v37 = vsub.f32 %v1745_v43, %v467_v36  ;;  %v1468_v43 = vld [vmem:[%s2099_s5 + $0x10] ss:$8 sps:$4 sm:$0xff]  }
 0x11e   : > { %v472_v39 = vmul.f32 %v1851_v35, %v1851_v35  ;;  %860 = vmatpush1.bf16.msra.mxu0 %v1468_v43 }
 0x11f   : > { %v473_v38 = vmul.f32 %v1854_v37, %v1854_v37  ;;  %861 = vmatprep.subr.bf16.mxu0 %v1473_v44 }
 0x121   : > { %538 = vmatprep.mubr.f32.mxu1 %v473_v38 }
 0x122   : > { %539 = vmatmul.mubr.f32.vlgmr.msra.gmra.mrb[0].mxu1 %v472_v39  ;;  %862 = vmatpush1.bf16.msra.mxu0 %v1471_v45 }
 0x123   : > { %863 = vmatprep.subr.bf16.mxu0 %v1476_v46 }
 0x126   : > { %864 = vmatpush1.bf16.msra.mxu0 %v1474_v47 }
 0x127   : > { %865 = vmatprep.subr.bf16.mxu0 %v1479_v48 }
 0x12a   : > { %866 = vmatpush1.bf16.msra.mxu0 %v1477_v49 }
 0x12b   : > { %867 = vmatprep.subr.bf16.mxu0 %v1482_v50 }
 0x12e   : > { %868 = vmatpush1.bf16.msra.mxu0 %v1480_v51 }
 0x12f   : > { %869 = vmatprep.subr.bf16.mxu0 %v1485_v52 }
 0x132   : > { %870 = vmatpush1.bf16.msra.mxu0 %v1483_v53 }
 0x133   : > { %871 = vmatprep.subr.bf16.mxu0 %v1488_v54 }
 0x136   : > { %872 = vmatpush1.bf16.msra.mxu0 %v1486_v55 }
 0x137   : > { %873 = vmatprep.subr.bf16.mxu0 %v1491_v56 }
 0x13a   : > { %874 = vmatpush1.bf16.msra.mxu0 %v1489_v57 }
 0x13b   : > { %875 = vmatprep.subr.bf16.mxu0 %v1494_v58 }
 0x13e   : > { %876 = vmatpush1.bf16.msra.mxu0 %v1492_v59 }
 0x13f   : > { %877 = vmatprep.subr.bf16.mxu0 %v1497_v60 }
 0x142   : > { %878 = vmatpush1.bf16.msra.mxu0 %v1495_v61 }
 0x143   : > { %879 = vmatprep.subr.bf16.mxu0 %v1500_v62 }
 0x146   : > { %880 = vmatpush1.bf16.msra.mxu0 %v1498_v63 }
 0x147   : > { %881 = vmatprep.subr.bf16.mxu0 %v1503_v0 }
 0x14a   : > { %882 = vmatpush1.bf16.msra.mxu0 %v1501_v1 }
 0x14b   : > { %883 = vmatprep.subr.bf16.mxu0 %v1506_v2 }
 0x14e   : > { %884 = vmatpush1.bf16.msra.mxu0 %v1504_v3 }
 0x14f   : > { %885 = vmatprep.subr.bf16.mxu0 %v1509_v4 }
 0x152   : > { %886 = vmatpush1.bf16.msra.mxu0 %v1507_v5 }
 0x153   : > { %887 = vmatprep.subr.bf16.mxu0 %v1512_v6 }
 0x156   : > { %888 = vmatpush1.bf16.msra.mxu0 %v1510_v7 }
 0x1f5   : > { %v540_v8 = vpop.f32.mrb[0].mxu1 }
 0x1f6   : > { %v541_v10 = vadd.f32 1e-05, %v540_v8  ;;  %v542_v11 = vpop.f32.mrb[1].mxu1 }
 0x1f7   : > { %v543_v12 = vadd.f32 1e-05, %v542_v11 }
 0x1f8   : > { %1561 = vrsqrt.f32 %v541_v10 }
 0x1f9   : > { %1563 = vrsqrt.f32 %v543_v12 }
 0x202   : > { %v1562_v19 = vpop.eup %1561 }
 0x203   : > { %v1564_v21 = vpop.eup %1563  ;;  %v547_v22 = vmul.f32 %v1562_v19, %v1851_v35 }
 0x204   : > { %v548_v24 = vmul.f32 %v1564_v21, %v1854_v37 }
 0x205   : > { %v561_v26 = vmul.f32 %v554_v18, %v547_v22  ;;  %v1515_v22 = vld [vmem:[%s2098_s4 + $0x4] ss:$8 sps:$4 sm:$0xff]  }
 0x206   : > { %v562_v27 = vmul.f32 %v558_v20, %v548_v24  ;;  %v1581_v20 = vmov 0.0   ;;  %v898_v24 = vld [vmem:[%s2100_s6] sm:$0xff] }
 0x207   : > { %v575_v28 = vadd.f32 %v568_v23, %v561_v26  ;;  %967 = vmatprep.mubr.f32.mxu1 %v1581_v20 }
 0x208   : > { %v576_v29 = vadd.f32 %v572_v25, %v562_v27  ;;  %v1513_v25 = vld [vmem:[%s2098_s4] ss:$8 sps:$4 sm:$0xff]   ;;  %v1518_v27 = vld [vmem:[%s2098_s4 + $0x14] ss:$8 sps:$4 sm:$0xff]  }
 0x209   : > { %v579_v30 = vmul.f32 0.70710677, %v575_v28  ;;  %v577_v10 = vmul.f32 0.5, %v575_v28 }
 0x20a   : > { %v580_v31 = vmul.f32 0.70710677, %v576_v29  ;;  %v578_v12 = vmul.f32 0.5, %v576_v29  ;;  %v1516_v29 = vld [vmem:[%s2098_s4 + $0x10] ss:$8 sps:$4 sm:$0xff]  }
 0x20b   : > { %v581_v32 = vand.u32 2147483647, %v579_v30  ;;  %vm621_vm0 = vcmp.ge.f32.partialorder %v579_v30, 0.0  ;;  %v1521_v30 = vld [vmem:[%s2098_s4 + $0x24] ss:$8 sps:$4 sm:$0xff]  }
 0x20c   : > { %v582_v33 = vand.u32 2147483647, %v580_v31  ;;  %vm622_vm1 = vcmp.ge.f32.partialorder %v580_v31, 0.0  ;;  %v1519_v31 = vld [vmem:[%s2098_s4 + $0x20] ss:$8 sps:$4 sm:$0xff]  }
 0x20d   : > { %v583_v34 = vmul.f32 0.3275911, %v581_v32  ;;  %v609_v35 = vsub.f32 0.0, %v581_v32 }
 0x20e   : > { %v584_v36 = vmul.f32 0.3275911, %v582_v33  ;;  %v610_v40 = vsub.f32 0.0, %v582_v33 }
 0x20f   : > { %v585_v38 = vadd.f32 1.0, %v583_v34  ;;  %v611_v37 = vmul.f32 %v609_v35, %v581_v32  ;;  %v1524_v32 = vld [vmem:[%s2098_s4 + $0x34] ss:$8 sps:$4 sm:$0xff]   ;;  %v1527_v34 = vld [vmem:[%s2098_s4 + $0x44] ss:$8 sps:$4 sm:$0xff]  }
 0x210   : > { %v586_v39 = vadd.f32 1.0, %v584_v36  ;;  %v612_v43 = vmul.f32 %v610_v40, %v582_v33  ;;  %v1522_v33 = vld [vmem:[%s2098_s4 + $0x30] ss:$8 sps:$4 sm:$0xff]   ;;  %v1525_v36 = vld [vmem:[%s2098_s4 + $0x40] ss:$8 sps:$4 sm:$0xff]  }
 0x211   : > { %1565 = vrcp.f32 %v585_v38  ;;  %v613_v48 = vmul.f32 1.442695, %v611_v37  ;;  %v1530_v38 = vld [vmem:[%s2098_s4 + $0x54] ss:$8 sps:$4 sm:$0xff]   ;;  %v1533_v35 = vld [vmem:[%s2098_s4 + $0x64] ss:$8 sps:$4 sm:$0xff]  }
 0x212   : > { %1567 = vrcp.f32 %v586_v39  ;;  %v615_v49 = vmul.f32 1.442695, %v612_v43  ;;  %v1528_v39 = vld [vmem:[%s2098_s4 + $0x50] ss:$8 sps:$4 sm:$0xff]   ;;  %v1531_v40 = vld [vmem:[%s2098_s4 + $0x60] ss:$8 sps:$4 sm:$0xff]  }
 0x213   : > { %1569 = vpow2.f32 %v613_v48  ;;  %v1534_v37 = vld [vmem:[%s2098_s4 + $0x70] ss:$8 sps:$4 sm:$0xff]   ;;  %v1537_v43 = vld [vmem:[%s2098_s4 + $0x80] ss:$8 sps:$4 sm:$0xff]   ;;  %v1548_v48 = vld [vmem:[%s2098_s4 + $0xb4] ss:$8 sps:$4 sm:$0xff]  }
 0x214   : > { %1571 = vpow2.f32 %v615_v49  ;;  %v1546_v49 = vld [vmem:[%s2098_s4 + $0xb0] ss:$8 sps:$4 sm:$0xff]  }
 0x21b   : > { %v1566_v41 = vpop.eup %1565 }
 0x21c   : > { %v1568_v42 = vpop.eup %1567  ;;  %v591_v44 = vmul.f32 1.0614054, %v1566_v41 }
 0x21d   : > { %v592_v45 = vmul.f32 1.0614054, %v1568_v42  ;;  %v1570_v63 = vpop.eup %1569 }
 0x21e   : > { %v593_v46 = vadd.f32 -1.4531521, %v591_v44  ;;  %v1572_v1 = vpop.eup %1571  ;;  %v1542_v44 = vld [vmem:[%s2098_s4 + $0x94] ss:$8 sps:$4 sm:$0xff]  }
 0x21f   : > { %v594_v47 = vadd.f32 -1.4531521, %v592_v45  ;;  %v1540_v45 = vld [vmem:[%s2098_s4 + $0x90] ss:$8 sps:$4 sm:$0xff]  }
 0x220   : > { %v595_v50 = vmul.f32 %v1566_v41, %v593_v46  ;;  %v1545_v46 = vld [vmem:[%s2098_s4 + $0xa4] ss:$8 sps:$4 sm:$0xff]  }
 0x221   : > { %v596_v51 = vmul.f32 %v1568_v42, %v594_v47  ;;  %v1543_v47 = vld [vmem:[%s2098_s4 + $0xa0] ss:$8 sps:$4 sm:$0xff]  }
 0x222   : > { %v597_v52 = vadd.f32 1.4214138, %v595_v50  ;;  %v1551_v50 = vld [vmem:[%s2098_s4 + $0xc4] ss:$8 sps:$4 sm:$0xff]  }
 0x223   : > { %v598_v53 = vadd.f32 1.4214138, %v596_v51  ;;  %v1549_v51 = vld [vmem:[%s2098_s4 + $0xc0] ss:$8 sps:$4 sm:$0xff]  }
 0x224   : > { %v599_v54 = vmul.f32 %v1566_v41, %v597_v52  ;;  %v1554_v52 = vld [vmem:[%s2098_s4 + $0xd4] ss:$8 sps:$4 sm:$0xff]  }
 0x225   : > { %v600_v55 = vmul.f32 %v1568_v42, %v598_v53  ;;  %v1552_v53 = vld [vmem:[%s2098_s4 + $0xd0] ss:$8 sps:$4 sm:$0xff]  }
 0x226   : > { %v601_v56 = vadd.f32 -0.28449672, %v599_v54  ;;  %v1557_v54 = vld [vmem:[%s2098_s4 + $0xe4] ss:$8 sps:$4 sm:$0xff]  }
 0x227   : > { %v602_v57 = vadd.f32 -0.28449672, %v600_v55  ;;  %v1555_v55 = vld [vmem:[%s2098_s4 + $0xe0] ss:$8 sps:$4 sm:$0xff]  }
 0x228   : > { %v603_v58 = vmul.f32 %v1566_v41, %v601_v56  ;;  %v1560_v56 = vld [vmem:[%s2098_s4 + $0xf4] ss:$8 sps:$4 sm:$0xff]  }
 0x229   : > { %v604_v59 = vmul.f32 %v1568_v42, %v602_v57  ;;  %v1558_v57 = vld [vmem:[%s2098_s4 + $0xf0] ss:$8 sps:$4 sm:$0xff]  }
 0x22a   : > { %v605_v60 = vadd.f32 0.2548296, %v603_v58 }
 0x22b   : > { %v606_v61 = vadd.f32 0.2548296, %v604_v59 }
 0x22c   : > { %v607_v62 = vmul.f32 %v1566_v41, %v605_v60  ;;  %v1536_v41 = vld [vmem:[%s2098_s4 + $0x74] ss:$8 sps:$4 sm:$0xff]   ;;  %v1175_v60 = vld [vmem:[%s2101_s7] sm:$0x3] }
 0x22d   : > { %v608_v0 = vmul.f32 %v1568_v42, %v606_v61  ;;  %v1539_v42 = vld [vmem:[%s2098_s4 + $0x84] ss:$8 sps:$4 sm:$0xff]   ;;  %v1180_v61 = vrot.slane %v1175_v60, %v1956_v14 }
 0x22e   : > { %v617_v2 = vmul.f32 %v1570_v63, %v607_v62  ;;  %v1184_v63 = vrot.slane %v1175_v60, %v1961_v16 }
 0x22f   : > { %v618_v3 = vmul.f32 %v1572_v1, %v608_v0 }
 0x230   : > { %v619_v4 = vsub.f32 1.0, %v617_v2  ;;  %v1189_v2 = vld [vmem:[%s2102_s8] sm:$0xff] }
 0x231   : > { %v620_v5 = vsub.f32 1.0, %v618_v3 }
 0x232   : > { %v623_v6 = vsub.f32 0.0, %v619_v4 }
 0x233   : > { %v624_v7 = vsub.f32 0.0, %v620_v5 }
 0x234   : > { %v625_v8 = vsel %vm621_vm0, %v619_v4, %v623_v6  ;;  %v1190_v6 = vld [vmem:[%s2102_s8 + $0x8] sm:$0xff] }
 0x235   : > { %v626_v9 = vsel %vm622_vm1, %v620_v5, %v624_v7  ;;  %v627_v11 = vadd.f32 1.0, %v625_v8 }
 0x236   : > { %v628_v13 = vadd.f32 1.0, %v626_v9 }
 0x237   : > { %v629_v15 = vmul.f32 %v627_v11, %v577_v10 }
 0x238   : > { %v630_v17 = vmul.f32 %v628_v13, %v578_v12 }
 0x239   : > { %v1972_v19 = vpack.c.bf16 %v629_v15, %v629_v15 }
 0x23a   : > { %v632_v18 = vpack.c.bf16 %v630_v17, %v630_v17 }
 0x23c   : > { %889 = vmatprep.mubr.bf16.mxu0 %v632_v18 }
 0x23d   : > { %890 = vmatmul.mubr.bf16.vlgmr.msra.gmra.mrb[4].mxu0 %v1972_v19 }
 0x310   : > { %v891_v21 = vpop.f32.mrb[4].mxu0 }
 0x311   : > { %v893_v23 = vpop.f32.mrb[5].mxu0 }
 0x312   : > { %v895_v26 = vpop.f32.mrb[6].mxu0  ;;  %903 = vmatprep.subr.mxu1 %v893_v23 }
 0x313   : > { %v896_v28 = vpop.f32.mrb[7].mxu0  ;;  %904 = vmatpush1.msra.mxu1 %v891_v21 }
 0x314   : > { %1291 = vmatmul.mubr.msk.f32.vlgmr.msra.gmra.mrb[2].mxu1 %vm899_vm2, %v898_v24  ;;  %1134 = vmatprep.subr.bf16.mxu1 %v1515_v22 }
 0x315   : > { %1135 = vmatpush1.bf16.msra.mxu1 %v1513_v25  ;;  %1166 = vmatprep.mubr.bf16.mxu1 %v632_v18 }
 0x316   : > { %1136 = vmatprep.subr.bf16.mxu1 %v1518_v27 }
 0x319   : > { %1137 = vmatpush1.bf16.msra.mxu1 %v1516_v29 }
 0x31a   : > { %1138 = vmatprep.subr.bf16.mxu1 %v1521_v30 }
 0x31d   : > { %1139 = vmatpush1.bf16.msra.mxu1 %v1519_v31 }
 0x31e   : > { %1140 = vmatprep.subr.bf16.mxu1 %v1524_v32 }
 0x321   : > { %1141 = vmatpush1.bf16.msra.mxu1 %v1522_v33 }
 0x322   : > { %1142 = vmatprep.subr.bf16.mxu1 %v1527_v34 }
 0x325   : > { %1143 = vmatpush1.bf16.msra.mxu1 %v1525_v36 }
 0x326   : > { %1144 = vmatprep.subr.bf16.mxu1 %v1530_v38 }
 0x329   : > { %1145 = vmatpush1.bf16.msra.mxu1 %v1528_v39 }
 0x32a   : > { %1146 = vmatprep.subr.bf16.mxu1 %v1533_v35 }
 0x32d   : > { %1147 = vmatpush1.bf16.msra.mxu1 %v1531_v40 }
 0x32e   : > { %1148 = vmatprep.subr.bf16.mxu1 %v1536_v41 }
 0x331   : > { %1149 = vmatpush1.bf16.msra.mxu1 %v1534_v37 }
 0x332   : > { %1150 = vmatprep.subr.bf16.mxu1 %v1539_v42 }
 0x335   : > { %1151 = vmatpush1.bf16.msra.mxu1 %v1537_v43 }
 0x336   : > { %1152 = vmatprep.subr.bf16.mxu1 %v1542_v44 }
 0x339   : > { %1153 = vmatpush1.bf16.msra.mxu1 %v1540_v45 }
 0x33a   : > { %1154 = vmatprep.subr.bf16.mxu1 %v1545_v46 }
 0x33d   : > { %1155 = vmatpush1.bf16.msra.mxu1 %v1543_v47 }
 0x33e   : > { %1156 = vmatprep.subr.bf16.mxu1 %v1548_v48 }
 0x341   : > { %1157 = vmatpush1.bf16.msra.mxu1 %v1546_v49 }
 0x342   : > { %1158 = vmatprep.subr.bf16.mxu1 %v1551_v50 }
 0x345   : > { %1159 = vmatpush1.bf16.msra.mxu1 %v1549_v51 }
 0x346   : > { %1160 = vmatprep.subr.bf16.mxu1 %v1554_v52 }
 0x349   : > { %1161 = vmatpush1.bf16.msra.mxu1 %v1552_v53 }
 0x34a   : > { %1162 = vmatprep.subr.bf16.mxu1 %v1557_v54 }
 0x34d   : > { %1163 = vmatpush1.bf16.msra.mxu1 %v1555_v55 }
 0x34e   : > { %1164 = vmatprep.subr.bf16.mxu1 %v1560_v56 }
 0x351   : > { %1165 = vmatpush1.bf16.msra.mxu1 %v1558_v57 }
 0x354   : > { %1167 = vmatmul.mubr.bf16.vlgmr.msra.gmra.mrb[4].mxu1 %v1972_v19 }
 0x3e7   : > { %v969_v58 = vpop.f32.mrb[2].mxu1 }
 0x3e8   : > { %v971_v59 = vpop.f32.mrb[3].mxu1 }
 0x427   : > { %v1168_v62 = vpop.f32.mrb[4].mxu1 }
 0x428   : > { %v1169_v0 = vadd.f32 %v1168_v62, %v969_v58  ;;  %v1170_v1 = vpop.f32.mrb[5].mxu1 }
 0x429   : > { %v1171_v3 = vadd.f32 %v1170_v1, %v971_v59  ;;  %v1172_v4 = vpop.f32.mrb[6].mxu1 }
 0x42a   : > { %v1187_v5 = vadd.f32 %v1180_v61, %v1169_v0  ;;  %v1173_v7 = vpop.f32.mrb[7].mxu1 }
 0x42b   : > { %v1188_v14 = vadd.f32 %v1184_v63, %v1171_v3 }
 0x42c   : > { %v1191_v16 = vadd.f32 %v1189_v2, %v1187_v5 }
 0x42d   : > { %v1192_v8 = vadd.f32 %v1190_v6, %v1188_v14 }
 0x42e   : > { %1193 = vst [vmem:[%s332_s16] sm:$0xff] %v1191_v16 }
 0x42f   : > { %1194 = vst [vmem:[%s332_s16 + $0x8] sm:$0xff] %v1192_v8 }
 0x430 PF: > { %s19_s30 = sadd.s32 1, %s1579_s30  }
 0x431   : > { %p16_p4 = scmp.ge.s32.totalorder %s19_s30, 4  }
 0x433   :  { %18 = sbr.rel (!%p16_p4) target bundleno = 1 (0x1), region = 86 }

</bundles_post_ra>
